<compile_context>
chip_gen: v6e
topology: v6e:2x2x1
jax: 0.10.0
libtpu: 0.0.40
codegen_flags: <defaults>
</compile_context>

<pallas_src>
import jax
import jax.numpy as jnp
from jax.experimental import pallas as pl
from jax.experimental.pallas import tpu as pltpu


# ----------------------------------------------------------------------------
# Pallas kernel: whole-array HBM -> HBM copy via one DMA (no VMEM bounce).
# ----------------------------------------------------------------------------
def _dma_copy_kernel(src_ref, dst_ref, sem):
    copy = pltpu.make_async_copy(src_ref, dst_ref, sem)
    copy.start()
    copy.wait()


def _pallas_copy(x: jax.Array, out_shape) -> jax.Array:
    """Explicitly materialize a copy of `x` with shape `out_shape`.

    `x` and `out_shape` must describe the same element count.  The source is
    presented to the kernel with exactly `out_shape` so the DMA is a plain
    whole-ref copy; dropping a size-1 axis keeps the row-major linearization,
    so that reshape is a zero-copy bitcast (unlike the old pad/slice wrapper).
    """
    out_shape = tuple(out_shape)
    src = x if x.shape == out_shape else jax.lax.reshape(x, out_shape)

    nbytes = src.size * jnp.dtype(src.dtype).itemsize
    return pl.pallas_call(
        _dma_copy_kernel,
        out_shape=jax.ShapeDtypeStruct(out_shape, src.dtype),
        in_specs=[pl.BlockSpec(memory_space=pl.ANY)],   # raw HBM ref, no auto-DMA
        out_specs=pl.BlockSpec(memory_space=pl.ANY),    # raw HBM ref, DMA writes it
        scratch_shapes=[pltpu.SemaphoreType.DMA(())],
        compiler_params=pltpu.CompilerParams(has_side_effects=True),
        cost_estimate=pl.CostEstimate(
            flops=0, transcendentals=0, bytes_accessed=2 * nbytes),
    )(src)


# ----------------------------------------------------------------------------
# Public wrapper: torch.squeeze(x, dim) semantics.
# ----------------------------------------------------------------------------
def squeeze_pallas(x: jax.Array, dim: int, *, force_copy: bool = False) -> jax.Array:
    """Pallas/JAX equivalent of torch.squeeze(x, dim).

    Default path is metadata-only (no kernel launch, no HBM traffic).
    `force_copy=True` routes through the HBM->HBM DMA Pallas kernel.
    """
    ndim = x.ndim

    # 0-d tensors: PyTorch accepts dim in {-1, 0} and returns the tensor as-is.
    if ndim == 0:
        if dim not in (-1, 0):
            raise ValueError(f"dim {dim} out of range for a 0-d tensor")
        return x

    if not (-ndim <= dim < ndim):
        raise ValueError(f"dim {dim} out of range for a {ndim}-d tensor")
    d = dim + ndim if dim < 0 else dim

    if x.shape[d] != 1:
        out_shape = x.shape  # no-op branch: squeeze of a non-size-1 dim
    else:
        out_shape = tuple(s for i, s in enumerate(x.shape) if i != d)

    # Metadata-only default path.  Also used when launching a copy kernel is
    # pointless or ill-defined: empty tensors (zero-size DMA) and 0-d results.
    if (not force_copy) or x.size == 0 or len(out_shape) == 0:
        if out_shape == x.shape:
            return x
        return jax.lax.reshape(x, out_shape)

    return _pallas_copy(x, out_shape)


if __name__ == "__main__":
    key = jax.random.PRNGKey(0)

    # Squeeze(dim=1) on an NCHW tensor with a singleton channel axis.
    dim = 1
    x = jax.random.normal(key, (2, 1, 16, 16), dtype=jnp.float32)
    ref = jnp.squeeze(x, axis=dim)

    # Fast (metadata-only) path — the one real callers should use.
    out_fast = jax.block_until_ready(squeeze_pallas(x, dim))
    assert out_fast.shape == ref.shape, (out_fast.shape, ref.shape)
    assert out_fast.dtype == ref.dtype
    assert jnp.array_equal(out_fast, ref), "metadata-path value mismatch"

    # Negative-dim normalization (dim=-3 is the same singleton axis).
    out_neg = jax.block_until_ready(squeeze_pallas(x, -3))
    assert jnp.array_equal(out_neg, ref), "negative-dim value mismatch"

    # Explicit-copy path — exercises the Pallas HBM->HBM DMA kernel on TPU.
    out_copy = jax.block_until_ready(squeeze_pallas(x, dim, force_copy=True))
    assert out_copy.shape == ref.shape, (out_copy.shape, ref.shape)
    assert out_copy.dtype == ref.dtype
    assert jnp.array_equal(out_copy, ref), "pallas-dma-copy value mismatch"

    # No-op branch (squeezing a non-size-1 dim): returns the input untouched.
    out_noop = jax.block_until_ready(squeeze_pallas(x, 2))
    assert out_noop.shape == x.shape
    assert jnp.array_equal(out_noop, x)
    out_noop_copy = jax.block_until_ready(squeeze_pallas(x, 2, force_copy=True))
    assert out_noop_copy.shape == x.shape
    assert jnp.array_equal(out_noop_copy, x), "no-op pallas-copy value mismatch"

    # Larger case: a single DMA descriptor moves the whole array at HBM rate.
    y = jax.random.normal(jax.random.PRNGKey(1), (4, 1, 512, 512), dtype=jnp.float32)
    ref_y = jnp.squeeze(y, axis=1)
    out_y = jax.block_until_ready(squeeze_pallas(y, 1, force_copy=True))
    assert out_y.shape == ref_y.shape
    assert jnp.array_equal(out_y, ref_y), "large pallas-dma-copy value mismatch"

    # Empty tensor: guarded, no kernel launch.
    z = jnp.zeros((2, 1, 0, 16), dtype=jnp.float32)
    out_z = jax.block_until_ready(squeeze_pallas(z, 1, force_copy=True))
    assert out_z.shape == (2, 0, 16)

    # 0-d tensor: PyTorch allows dim in {-1, 0} and returns it unchanged.
    s = jnp.asarray(3.0, dtype=jnp.float32)
    out_s = jax.block_until_ready(squeeze_pallas(s, 0))
    assert out_s.shape == () and bool(out_s == s)

    print("KERNEL_OK")
</pallas_src>

<mosaic_0001>
module attributes {stable_mosaic.version = 11 : i64} {
  func.func @_dma_copy_kernel(%arg0: memref<2x16x16xf32, #tpu.memory_space<any>>, %arg1: memref<2x16x16xf32, #tpu.memory_space<any>>, %arg2: memref<!tpu.dma_semaphore, #tpu.memory_space<semaphore_mem>>) attributes {dimension_semantics = [], scalar_prefetch = 0 : i64, scratch_operands = 1 : i64, tpu.core_type = #tpu.core_type<tc>} {
    tpu.enqueue_dma source(%arg0 : memref<2x16x16xf32, #tpu.memory_space<any>>) target(%arg1 : memref<2x16x16xf32, #tpu.memory_space<any>>) target_semaphore(%arg2 : memref<!tpu.dma_semaphore, #tpu.memory_space<semaphore_mem>>)
    tpu.wait_dma2 semaphore(%arg2 : memref<!tpu.dma_semaphore, #tpu.memory_space<semaphore_mem>>) src(%arg0 : memref<2x16x16xf32, #tpu.memory_space<any>>) dst(%arg1 : memref<2x16x16xf32, #tpu.memory_space<any>>)
    return
  }
}

</mosaic_0001>

<bundles_post_ra>
// kernel: tpu_custom_call.1
= control target key start
LH: loop header
LB: loop body
LE: loop exit
PB: predicated region body
PF: predicated region fallthrough
CT: control target
= control target key end

     0   :  { %s29_s6 = smov [#allocation2]   ;;  %s30_s7 = smov 131072   ;;  %s48_s0 = inlined_call_operand.hbm [shape: f32[2,16,16], index: 0, kind: input, shape index: {}]   ;;  %s49_s1 = inlined_call_operand.hbm [shape: f32[2,16,16], index: 1, kind: output, shape index: {}]  }
   0x1   :  { %s31_s8 = smov 0  }
   0x2   :  { %12 = dma.general %s48_s0, 512, %s49_s1, %s29_s6, %s30_s7, [#allocation4], %s31_s8, 0  }
   0x3   :  { %27 = dma.done.wait [#allocation2], 512 }
   0x4   :  { %28 = vsyncadd [#allocation2], 4294966784 }
   0x5   :  { %17 = vsyncmov [#allocation2] }
   0x8   :  { %s18_s13 = vpop.sfrf %17 }
   0x9   :  { %p23_p0 = scmp.ne.s32.totalorder %s18_s13, 0 }
   0xb   :  { %22 = shalt.err (%p23_p0)  }

</bundles_post_ra>
